<compile_context>
chip_gen: v7x
topology: tpu7x:2x2x1
jax: 0.10.0
libtpu: 0.0.40
codegen_flags: <defaults>
</compile_context>

<pallas_src>
import functools

import jax
import jax.numpy as jnp
from jax import lax
from jax.experimental import pallas as pl
from jax.experimental.pallas import tpu as pltpu

PIXELNORM_EPS = 1e-8  # PixelNorm epsilon from the PyTorch module


def _round_up(n, m):
    return ((n + m - 1) // m) * m


def mapping_kernel(z_ref, w0_ref, b0_ref, wh_ref, bh_ref, wf_ref, bf_ref,
                   o_ref, *, n_rest, z_dim):
    """One grid step = one block of batch rows.

    z_ref : (TB, Z)            unpadded latent rows
    w0_ref: (Z, ZP)   bf16     first hidden weight (pre-scaled, out-padded)
    b0_ref: (1, ZP)   f32      first hidden bias (zero-padded)
    wh_ref: (L-1, ZP, ZP) bf16 remaining hidden weights
    bh_ref: (L-1, 1, ZP)  f32  remaining hidden biases
    wf_ref: (ZP, WP)  bf16     final weight
    bf_ref: (1, WP)   f32      final bias
    o_ref : (TB, WP)           lane-dense output block (sliced to Wd outside)
    """
    x = z_ref[...].astype(jnp.float32)                        # (TB, Z)

    # PixelNorm over the TRUE feature count (lane axis of the unpadded input).
    ms = jnp.sum(x * x, axis=-1, keepdims=True) * (1.0 / z_dim)
    x = x * lax.rsqrt(ms + PIXELNORM_EPS)

    # First hidden layer: (TB, Z) @ (Z, ZP) -> lane-dense (TB, ZP).
    h = jnp.dot(x.astype(jnp.bfloat16), w0_ref[...],
                preferred_element_type=jnp.float32)
    h = jnp.maximum(h + b0_ref[...], 0.0)

    # Remaining hidden layers (scale folded into weights in the wrapper).
    for i in range(n_rest):
        h = jnp.dot(h.astype(jnp.bfloat16), wh_ref[i],
                    preferred_element_type=jnp.float32)
        h = jnp.maximum(h + bh_ref[i], 0.0)

    # Final layer (no ReLU).
    y = jnp.dot(h.astype(jnp.bfloat16), wf_ref[...],
                preferred_element_type=jnp.float32)
    o_ref[...] = (y + bf_ref[...]).astype(o_ref.dtype)


def prepare_mapping_params(hidden_ws, hidden_bs, final_w, final_b):
    """Fold the WSLinear scale into pre-transposed, lane-padded bf16 weights.

    Call once; reuse the result across forward calls.
    hidden_ws[i]: (z_dim, z_dim) torch-layout (out, in); final_w: (w_dim, z_dim).
    """
    Z = hidden_ws[0].shape[1]
    Wd = final_w.shape[0]
    ZP = _round_up(Z, 128)
    WP = _round_up(Wd, 128)
    scale = (2.0 / Z) ** 0.5  # every WSLinear here has in_features = z_dim

    def pad2(a, rows, cols):
        return jnp.pad(a, ((0, rows - a.shape[0]), (0, cols - a.shape[1])))

    def pad1(a, cols):
        return jnp.pad(a, (0, cols - a.shape[0]))

    w0 = pad2(hidden_ws[0].T * scale, Z, ZP).astype(jnp.bfloat16)       # (Z, ZP)
    b0 = pad1(hidden_bs[0], ZP).reshape(1, ZP).astype(jnp.float32)      # (1, ZP)
    wh = jnp.stack([pad2(w.T * scale, ZP, ZP) for w in hidden_ws[1:]]
                   ).astype(jnp.bfloat16)                               # (L-1,ZP,ZP)
    bh = jnp.stack([pad1(b, ZP) for b in hidden_bs[1:]]
                   ).reshape(len(hidden_ws) - 1, 1, ZP).astype(jnp.float32)
    wf = pad2(final_w.T * scale, ZP, WP).astype(jnp.bfloat16)           # (ZP, WP)
    bf = pad1(final_b, WP).reshape(1, WP).astype(jnp.float32)           # (1, WP)

    return dict(w0=w0, b0=b0, wh=wh, bh=bh, wf=wf, bf=bf, z_dim=Z, w_dim=Wd)


def mapping_forward(z, params, *, block_rows=1024):
    """z: (N, z_dim) float32. params: output of prepare_mapping_params."""
    N, Z = z.shape
    Wd = params["w_dim"]
    wh = params["wh"]
    L_rest, ZP, _ = wh.shape
    WP = params["wf"].shape[1]

    # Batch tiling: 8-aligned sublane blocks, tight tail padding, and >= 2
    # grid blocks when the batch allows it (keeps both v7x TensorCores busy).
    n8 = _round_up(N, 8)
    tb = min(block_rows, n8)
    if n8 > 8 and -(-n8 // tb) < 2:
        tb = max(8, _round_up(-(-n8 // 2), 8))
    grid = -(-n8 // tb)
    n_pad = grid * tb
    z_p = z if n_pad == N else jnp.pad(z, ((0, n_pad - N), (0, 0)))

    kernel = functools.partial(mapping_kernel, n_rest=L_rest, z_dim=Z)

    out = pl.pallas_call(
        kernel,
        out_shape=jax.ShapeDtypeStruct((n_pad, WP), z.dtype),
        grid_spec=pltpu.PrefetchScalarGridSpec(
            num_scalar_prefetch=0,
            grid=(grid,),
            in_specs=[
                pl.BlockSpec((tb, Z), lambda b: (b, 0)),            # z rows
                pl.BlockSpec((Z, ZP), lambda b: (0, 0)),            # w0 (resident)
                pl.BlockSpec((1, ZP), lambda b: (0, 0)),            # b0 (resident)
                pl.BlockSpec((L_rest, ZP, ZP), lambda b: (0, 0, 0)),  # wh (resident)
                pl.BlockSpec((L_rest, 1, ZP), lambda b: (0, 0, 0)),   # bh (resident)
                pl.BlockSpec((ZP, WP), lambda b: (0, 0)),           # wf (resident)
                pl.BlockSpec((1, WP), lambda b: (0, 0)),            # bf (resident)
            ],
            out_specs=pl.BlockSpec((tb, WP), lambda b: (b, 0)),
        ),
        compiler_params=pltpu.CompilerParams(
            dimension_semantics=("parallel",)),
    )(z_p, params["w0"], params["b0"], wh, params["bh"],
      params["wf"], params["bf"])

    return out[:N, :Wd]


def mapping_ref(z, hidden_ws, hidden_bs, final_w, final_b):
    """Pure-JAX f32 reference mirroring the PyTorch MAPPING forward."""
    Z = z.shape[1]
    scale = (2.0 / Z) ** 0.5
    x = z / jnp.sqrt(jnp.mean(z * z, axis=1, keepdims=True) + PIXELNORM_EPS)
    for w, b in zip(hidden_ws, hidden_bs):
        x = jnp.maximum((x * scale) @ w.T + b, 0.0)
    return (x * scale) @ final_w.T + final_b


if __name__ == "__main__":
    N = 2
    z_dim = 32
    w_dim = 32
    n_hidden = 7

    key = jax.random.PRNGKey(0)
    kz, *kw = jax.random.split(key, 1 + n_hidden + 1)

    z = jax.random.normal(kz, (N, z_dim), dtype=jnp.float32)

    # WSLinear init: weight ~ N(0, 1), bias = 0.
    hidden_ws = [jax.random.normal(kw[i], (z_dim, z_dim), dtype=jnp.float32)
                 for i in range(n_hidden)]
    hidden_bs = [jnp.zeros((z_dim,), dtype=jnp.float32)
                 for _ in range(n_hidden)]
    final_w = jax.random.normal(kw[n_hidden], (w_dim, z_dim), dtype=jnp.float32)
    final_b = jnp.zeros((w_dim,), dtype=jnp.float32)

    params = prepare_mapping_params(hidden_ws, hidden_bs, final_w, final_b)

    out = mapping_forward(z, params)
    out = jax.block_until_ready(out)

    ref = mapping_ref(z, hidden_ws, hidden_bs, final_w, final_b)
    assert out.shape == (N, w_dim)
    # bf16 MXU operands (f32 accumulation) over 8 layers -> ~1% relative error
    # vs the pure-f32 reference; use a tolerance consistent with that.
    assert jnp.allclose(out, ref, atol=5e-2, rtol=5e-2), "mismatch vs reference"

    print("KERNEL_OK")
</pallas_src>

<mosaic_0001>
module attributes {stable_mosaic.version = 11 : i64} {
  func.func @mapping_kernel(%arg0: i32, %arg1: memref<8x32xf32, #tpu.memory_space<vmem>>, %arg2: memref<32x128xbf16, #tpu.memory_space<vmem>>, %arg3: memref<1x128xf32, #tpu.memory_space<vmem>>, %arg4: memref<6x128x128xbf16, #tpu.memory_space<vmem>>, %arg5: memref<6x1x128xf32, #tpu.memory_space<vmem>>, %arg6: memref<128x128xbf16, #tpu.memory_space<vmem>>, %arg7: memref<1x128xf32, #tpu.memory_space<vmem>>, %arg8: memref<8x128xf32, #tpu.memory_space<vmem>>) attributes {dimension_semantics = [#tpu.dimension_semantics<parallel>], iteration_bounds = array<i64: 1>, scalar_prefetch = 0 : i64, scratch_operands = 0 : i64, tpu.core_type = #tpu.core_type<tc>, window_params = [{transform_indices = @transform_0, window_bounds = array<i64: 8, 32>}, {pipeline_mode = #tpu.pipeline_mode<synchronous>, transform_indices = @transform_1, window_bounds = array<i64: 32, 128>}, {pipeline_mode = #tpu.pipeline_mode<synchronous>, transform_indices = @transform_2, window_bounds = array<i64: 1, 128>}, {pipeline_mode = #tpu.pipeline_mode<synchronous>, transform_indices = @transform_3, window_bounds = array<i64: 6, 128, 128>}, {pipeline_mode = #tpu.pipeline_mode<synchronous>, transform_indices = @transform_4, window_bounds = array<i64: 6, 1, 128>}, {pipeline_mode = #tpu.pipeline_mode<synchronous>, transform_indices = @transform_5, window_bounds = array<i64: 128, 128>}, {pipeline_mode = #tpu.pipeline_mode<synchronous>, transform_indices = @transform_6, window_bounds = array<i64: 1, 128>}, {transform_indices = @transform_7, window_bounds = array<i64: 8, 128>}]} {
    %c0 = arith.constant 0 : index
    %c0_0 = arith.constant 0 : index
    %0 = vector.load %arg1[%c0, %c0_0] : memref<8x32xf32, #tpu.memory_space<vmem>>, vector<8x32xf32>
    %1 = arith.mulf %0, %0 : vector<8x32xf32>
    %cst = arith.constant dense<0.000000e+00> : vector<8xf32>
    %2 = vector.multi_reduction <add>, %1, %cst [1] : vector<8x32xf32> to vector<8xf32>
    %3 = vector.shape_cast %2 : vector<8xf32> to vector<8x1xf32>
    %cst_1 = arith.constant 3.125000e-02 : f32
    %4 = vector.broadcast %cst_1 : f32 to vector<8x1xf32>
    %5 = arith.mulf %3, %4 : vector<8x1xf32>
    %cst_2 = arith.constant 9.99999993E-9 : f32
    %6 = vector.broadcast %cst_2 : f32 to vector<8x1xf32>
    %7 = arith.addf %5, %6 : vector<8x1xf32>
    %8 = math.rsqrt %7 : vector<8x1xf32>
    %9 = vector.broadcast %8 : vector<8x1xf32> to vector<8x32xf32>
    %10 = arith.mulf %0, %9 : vector<8x32xf32>
    %11 = arith.truncf %10 : vector<8x32xf32> to vector<8x32xbf16>
    %c0_3 = arith.constant 0 : index
    %c0_4 = arith.constant 0 : index
    %12 = vector.load %arg2[%c0_3, %c0_4] : memref<32x128xbf16, #tpu.memory_space<vmem>>, vector<32x128xbf16>
    %cst_5 = arith.constant dense<0.000000e+00> : vector<8x128xf32>
    %13 = tpu.matmul %11, %12, %cst_5 {dimension_numbers = #tpu.dot_dimension_numbers<[1], [0], [0], [1], [0, 0, 1, 1], [], []>} : vector<8x32xbf16>, vector<32x128xbf16>, vector<8x128xf32> -> vector<8x128xf32>
    %c0_6 = arith.constant 0 : index
    %c0_7 = arith.constant 0 : index
    %14 = vector.load %arg3[%c0_6, %c0_7] : memref<1x128xf32, #tpu.memory_space<vmem>>, vector<1x128xf32>
    %15 = vector.broadcast %14 : vector<1x128xf32> to vector<8x128xf32>
    %16 = arith.addf %13, %15 : vector<8x128xf32>
    %cst_8 = arith.constant 0.000000e+00 : f32
    %17 = vector.broadcast %cst_8 : f32 to vector<8x128xf32>
    %18 = arith.maximumf %16, %17 : vector<8x128xf32>
    %19 = arith.truncf %18 : vector<8x128xf32> to vector<8x128xbf16>
    %c0_9 = arith.constant 0 : index
    %c0_10 = arith.constant 0 : index
    %c0_11 = arith.constant 0 : index
    %20 = vector.load %arg4[%c0_9, %c0_10, %c0_11] : memref<6x128x128xbf16, #tpu.memory_space<vmem>>, vector<1x128x128xbf16>
    %21 = vector.shape_cast %20 : vector<1x128x128xbf16> to vector<128x128xbf16>
    %cst_12 = arith.constant dense<0.000000e+00> : vector<8x128xf32>
    %22 = tpu.matmul %19, %21, %cst_12 {dimension_numbers = #tpu.dot_dimension_numbers<[1], [0], [0], [1], [0, 0, 1, 1], [], []>} : vector<8x128xbf16>, vector<128x128xbf16>, vector<8x128xf32> -> vector<8x128xf32>
    %c0_13 = arith.constant 0 : index
    %c0_14 = arith.constant 0 : index
    %c0_15 = arith.constant 0 : index
    %23 = vector.load %arg5[%c0_13, %c0_14, %c0_15] : memref<6x1x128xf32, #tpu.memory_space<vmem>>, vector<1x1x128xf32>
    %24 = vector.shape_cast %23 : vector<1x1x128xf32> to vector<1x128xf32>
    %25 = vector.broadcast %24 : vector<1x128xf32> to vector<8x128xf32>
    %26 = arith.addf %22, %25 : vector<8x128xf32>
    %cst_16 = arith.constant 0.000000e+00 : f32
    %27 = vector.broadcast %cst_16 : f32 to vector<8x128xf32>
    %28 = arith.maximumf %26, %27 : vector<8x128xf32>
    %29 = arith.truncf %28 : vector<8x128xf32> to vector<8x128xbf16>
    %c1 = arith.constant 1 : index
    %c0_17 = arith.constant 0 : index
    %c0_18 = arith.constant 0 : index
    %30 = vector.load %arg4[%c1, %c0_17, %c0_18] : memref<6x128x128xbf16, #tpu.memory_space<vmem>>, vector<1x128x128xbf16>
    %31 = vector.shape_cast %30 : vector<1x128x128xbf16> to vector<128x128xbf16>
    %cst_19 = arith.constant dense<0.000000e+00> : vector<8x128xf32>
    %32 = tpu.matmul %29, %31, %cst_19 {dimension_numbers = #tpu.dot_dimension_numbers<[1], [0], [0], [1], [0, 0, 1, 1], [], []>} : vector<8x128xbf16>, vector<128x128xbf16>, vector<8x128xf32> -> vector<8x128xf32>
    %c1_20 = arith.constant 1 : index
    %c0_21 = arith.constant 0 : index
    %c0_22 = arith.constant 0 : index
    %33 = vector.load %arg5[%c1_20, %c0_21, %c0_22] : memref<6x1x128xf32, #tpu.memory_space<vmem>>, vector<1x1x128xf32>
    %34 = vector.shape_cast %33 : vector<1x1x128xf32> to vector<1x128xf32>
    %35 = vector.broadcast %34 : vector<1x128xf32> to vector<8x128xf32>
    %36 = arith.addf %32, %35 : vector<8x128xf32>
    %cst_23 = arith.constant 0.000000e+00 : f32
    %37 = vector.broadcast %cst_23 : f32 to vector<8x128xf32>
    %38 = arith.maximumf %36, %37 : vector<8x128xf32>
    %39 = arith.truncf %38 : vector<8x128xf32> to vector<8x128xbf16>
    %c2 = arith.constant 2 : index
    %c0_24 = arith.constant 0 : index
    %c0_25 = arith.constant 0 : index
    %40 = vector.load %arg4[%c2, %c0_24, %c0_25] : memref<6x128x128xbf16, #tpu.memory_space<vmem>>, vector<1x128x128xbf16>
    %41 = vector.shape_cast %40 : vector<1x128x128xbf16> to vector<128x128xbf16>
    %cst_26 = arith.constant dense<0.000000e+00> : vector<8x128xf32>
    %42 = tpu.matmul %39, %41, %cst_26 {dimension_numbers = #tpu.dot_dimension_numbers<[1], [0], [0], [1], [0, 0, 1, 1], [], []>} : vector<8x128xbf16>, vector<128x128xbf16>, vector<8x128xf32> -> vector<8x128xf32>
    %c2_27 = arith.constant 2 : index
    %c0_28 = arith.constant 0 : index
    %c0_29 = arith.constant 0 : index
    %43 = vector.load %arg5[%c2_27, %c0_28, %c0_29] : memref<6x1x128xf32, #tpu.memory_space<vmem>>, vector<1x1x128xf32>
    %44 = vector.shape_cast %43 : vector<1x1x128xf32> to vector<1x128xf32>
    %45 = vector.broadcast %44 : vector<1x128xf32> to vector<8x128xf32>
    %46 = arith.addf %42, %45 : vector<8x128xf32>
    %cst_30 = arith.constant 0.000000e+00 : f32
    %47 = vector.broadcast %cst_30 : f32 to vector<8x128xf32>
    %48 = arith.maximumf %46, %47 : vector<8x128xf32>
    %49 = arith.truncf %48 : vector<8x128xf32> to vector<8x128xbf16>
    %c3 = arith.constant 3 : index
    %c0_31 = arith.constant 0 : index
    %c0_32 = arith.constant 0 : index
    %50 = vector.load %arg4[%c3, %c0_31, %c0_32] : memref<6x128x128xbf16, #tpu.memory_space<vmem>>, vector<1x128x128xbf16>
    %51 = vector.shape_cast %50 : vector<1x128x128xbf16> to vector<128x128xbf16>
    %cst_33 = arith.constant dense<0.000000e+00> : vector<8x128xf32>
    %52 = tpu.matmul %49, %51, %cst_33 {dimension_numbers = #tpu.dot_dimension_numbers<[1], [0], [0], [1], [0, 0, 1, 1], [], []>} : vector<8x128xbf16>, vector<128x128xbf16>, vector<8x128xf32> -> vector<8x128xf32>
    %c3_34 = arith.constant 3 : index
    %c0_35 = arith.constant 0 : index
    %c0_36 = arith.constant 0 : index
    %53 = vector.load %arg5[%c3_34, %c0_35, %c0_36] : memref<6x1x128xf32, #tpu.memory_space<vmem>>, vector<1x1x128xf32>
    %54 = vector.shape_cast %53 : vector<1x1x128xf32> to vector<1x128xf32>
    %55 = vector.broadcast %54 : vector<1x128xf32> to vector<8x128xf32>
    %56 = arith.addf %52, %55 : vector<8x128xf32>
    %cst_37 = arith.constant 0.000000e+00 : f32
    %57 = vector.broadcast %cst_37 : f32 to vector<8x128xf32>
    %58 = arith.maximumf %56, %57 : vector<8x128xf32>
    %59 = arith.truncf %58 : vector<8x128xf32> to vector<8x128xbf16>
    %c4 = arith.constant 4 : index
    %c0_38 = arith.constant 0 : index
    %c0_39 = arith.constant 0 : index
    %60 = vector.load %arg4[%c4, %c0_38, %c0_39] : memref<6x128x128xbf16, #tpu.memory_space<vmem>>, vector<1x128x128xbf16>
    %61 = vector.shape_cast %60 : vector<1x128x128xbf16> to vector<128x128xbf16>
    %cst_40 = arith.constant dense<0.000000e+00> : vector<8x128xf32>
    %62 = tpu.matmul %59, %61, %cst_40 {dimension_numbers = #tpu.dot_dimension_numbers<[1], [0], [0], [1], [0, 0, 1, 1], [], []>} : vector<8x128xbf16>, vector<128x128xbf16>, vector<8x128xf32> -> vector<8x128xf32>
    %c4_41 = arith.constant 4 : index
    %c0_42 = arith.constant 0 : index
    %c0_43 = arith.constant 0 : index
    %63 = vector.load %arg5[%c4_41, %c0_42, %c0_43] : memref<6x1x128xf32, #tpu.memory_space<vmem>>, vector<1x1x128xf32>
    %64 = vector.shape_cast %63 : vector<1x1x128xf32> to vector<1x128xf32>
    %65 = vector.broadcast %64 : vector<1x128xf32> to vector<8x128xf32>
    %66 = arith.addf %62, %65 : vector<8x128xf32>
    %cst_44 = arith.constant 0.000000e+00 : f32
    %67 = vector.broadcast %cst_44 : f32 to vector<8x128xf32>
    %68 = arith.maximumf %66, %67 : vector<8x128xf32>
    %69 = arith.truncf %68 : vector<8x128xf32> to vector<8x128xbf16>
    %c5 = arith.constant 5 : index
    %c0_45 = arith.constant 0 : index
    %c0_46 = arith.constant 0 : index
    %70 = vector.load %arg4[%c5, %c0_45, %c0_46] : memref<6x128x128xbf16, #tpu.memory_space<vmem>>, vector<1x128x128xbf16>
    %71 = vector.shape_cast %70 : vector<1x128x128xbf16> to vector<128x128xbf16>
    %cst_47 = arith.constant dense<0.000000e+00> : vector<8x128xf32>
    %72 = tpu.matmul %69, %71, %cst_47 {dimension_numbers = #tpu.dot_dimension_numbers<[1], [0], [0], [1], [0, 0, 1, 1], [], []>} : vector<8x128xbf16>, vector<128x128xbf16>, vector<8x128xf32> -> vector<8x128xf32>
    %c5_48 = arith.constant 5 : index
    %c0_49 = arith.constant 0 : index
    %c0_50 = arith.constant 0 : index
    %73 = vector.load %arg5[%c5_48, %c0_49, %c0_50] : memref<6x1x128xf32, #tpu.memory_space<vmem>>, vector<1x1x128xf32>
    %74 = vector.shape_cast %73 : vector<1x1x128xf32> to vector<1x128xf32>
    %75 = vector.broadcast %74 : vector<1x128xf32> to vector<8x128xf32>
    %76 = arith.addf %72, %75 : vector<8x128xf32>
    %cst_51 = arith.constant 0.000000e+00 : f32
    %77 = vector.broadcast %cst_51 : f32 to vector<8x128xf32>
    %78 = arith.maximumf %76, %77 : vector<8x128xf32>
    %79 = arith.truncf %78 : vector<8x128xf32> to vector<8x128xbf16>
    %c0_52 = arith.constant 0 : index
    %c0_53 = arith.constant 0 : index
    %80 = vector.load %arg6[%c0_52, %c0_53] : memref<128x128xbf16, #tpu.memory_space<vmem>>, vector<128x128xbf16>
    %cst_54 = arith.constant dense<0.000000e+00> : vector<8x128xf32>
    %81 = tpu.matmul %79, %80, %cst_54 {dimension_numbers = #tpu.dot_dimension_numbers<[1], [0], [0], [1], [0, 0, 1, 1], [], []>} : vector<8x128xbf16>, vector<128x128xbf16>, vector<8x128xf32> -> vector<8x128xf32>
    %c0_55 = arith.constant 0 : index
    %c0_56 = arith.constant 0 : index
    %82 = vector.load %arg7[%c0_55, %c0_56] : memref<1x128xf32, #tpu.memory_space<vmem>>, vector<1x128xf32>
    %83 = vector.broadcast %82 : vector<1x128xf32> to vector<8x128xf32>
    %84 = arith.addf %81, %83 : vector<8x128xf32>
    %c0_57 = arith.constant 0 : index
    %c0_58 = arith.constant 0 : index
    %85 = vector.load %arg8[%c0_57, %c0_58] : memref<8x128xf32, #tpu.memory_space<vmem>>, vector<8x128xf32>
    tpu.vector_store %arg8[%c0_57, %c0_58], %84 {strides = array<i32>} : memref<8x128xf32, #tpu.memory_space<vmem>>, vector<8x128xf32>,
    return
  }
  func.func @transform_0(%arg0: i32) -> (i32, i32) {
    %c0_i32 = arith.constant 0 : i32
    %c0_i32_0 = arith.constant 0 : i32
    return %arg0, %c0_i32 : i32, i32
  }
  func.func @transform_1(%arg0: i32) -> (i32, i32) {
    %c0_i32 = arith.constant 0 : i32
    %c0_i32_0 = arith.constant 0 : i32
    %c0_i32_1 = arith.constant 0 : i32
    return %c0_i32, %c0_i32_0 : i32, i32
  }
  func.func @transform_2(%arg0: i32) -> (i32, i32) {
    %c0_i32 = arith.constant 0 : i32
    %c0_i32_0 = arith.constant 0 : i32
    %c0_i32_1 = arith.constant 0 : i32
    return %c0_i32, %c0_i32_0 : i32, i32
  }
  func.func @transform_3(%arg0: i32) -> (i32, i32, i32) {
    %c0_i32 = arith.constant 0 : i32
    %c0_i32_0 = arith.constant 0 : i32
    %c0_i32_1 = arith.constant 0 : i32
    %c0_i32_2 = arith.constant 0 : i32
    return %c0_i32, %c0_i32_0, %c0_i32_1 : i32, i32, i32
  }
  func.func @transform_4(%arg0: i32) -> (i32, i32, i32) {
    %c0_i32 = arith.constant 0 : i32
    %c0_i32_0 = arith.constant 0 : i32
    %c0_i32_1 = arith.constant 0 : i32
    %c0_i32_2 = arith.constant 0 : i32
    return %c0_i32, %c0_i32_0, %c0_i32_1 : i32, i32, i32
  }
  func.func @transform_5(%arg0: i32) -> (i32, i32) {
    %c0_i32 = arith.constant 0 : i32
    %c0_i32_0 = arith.constant 0 : i32
    %c0_i32_1 = arith.constant 0 : i32
    return %c0_i32, %c0_i32_0 : i32, i32
  }
  func.func @transform_6(%arg0: i32) -> (i32, i32) {
    %c0_i32 = arith.constant 0 : i32
    %c0_i32_0 = arith.constant 0 : i32
    %c0_i32_1 = arith.constant 0 : i32
    return %c0_i32, %c0_i32_0 : i32, i32
  }
  func.func @transform_7(%arg0: i32) -> (i32, i32) {
    %c0_i32 = arith.constant 0 : i32
    %c0_i32_0 = arith.constant 0 : i32
    return %arg0, %c0_i32 : i32, i32
  }
}

</mosaic_0001>

<bundles_post_ra>
// kernel: tpu_custom_call.1
= control target key start
LH: loop header
LB: loop body
LE: loop exit
PB: predicated region body
PF: predicated region fallthrough
CT: control target
= control target key end

     0   :  { %12 = vsyncpa [#allocation3], 0  ;;  %s1668_s0 = inlined_call_operand.hbm [shape: f32[8,32], index: 0, kind: input, shape index: {}]   ;;  %s1669_s1 = inlined_call_operand.hbm [shape: bf16[32,128], index: 1, kind: input, shape index: {}]   ;;  %s1670_s2 = inlined_call_operand.vmem [shape: f32[1,128], index: 2, kind: input, shape index: {}]   ;;  %s1671_s3 = inlined_call_operand.hbm [shape: bf16[6,128,128], index: 3, kind: input, shape index: {}]   ;;  %s1672_s4 = inlined_call_operand.vmem [shape: f32[6,1,128], index: 4, kind: input, shape index: {}]   ;;  %s1673_s5 = inlined_call_operand.hbm [shape: bf16[128,128], index: 5, kind: input, shape index: {}]   ;;  %s1674_s6 = inlined_call_operand.vmem [shape: f32[1,128], index: 6, kind: input, shape index: {}]   ;;  %s1675_s7 = inlined_call_operand.hbm [shape: f32[8,128], index: 7, kind: output, shape index: {}]  }
   0x1   :  { %13 = vsyncpa [#allocation6], 0 }
   0x2   :  { %14 = vsyncpa [#allocation9], 0 }
   0x3   :  { %15 = vsyncpa [#allocation4], 0  ;;  %s1450_s24 = smov [#allocation5]   ;;  %s1332_s28 = scalar_lea.hbm %s1669_s1, 256 }
   0x4   :  { %s31_s25 = sshll.u32 %s1450_s24, 4  ;;  %p1333_p0 = scmp.ne.s32.totalorder %s1669_s1, %s1332_s28  ;;  %s32_s25 = int_to_ptr.vmem [resolvable:$true] %s31_s25 }
   0x5   :  { %p1336_p1 = scmp.lt.u32.totalorder %s1332_s28, %s1669_s1 }
   0x7   :  { %p1338_p2 = pnand %p1336_p1, %p1333_p0 }
   0x9   :  { %1341 = shalt.err (!%p1338_p2)
}
   0xa   :  { %s1342_s10 = scalar_lea.vmem %s32_s25, 256  ;;  %p1347_p4 = scmp.lt.s32.totalorder %s32_s25, %s32_s25 }
   0xb   :  { %p1343_p3 = scmp.ne.s32.totalorder %s32_s25, %s1342_s10  ;;  %p1348_p5 = scmp.lt.s32.totalorder %s1342_s10, %s1342_s10 }
   0xd   :  { %p1349_p6 = por %p1348_p5, %p1347_p4 }
   0xf   :  { %p1350_p7 = pnand %p1349_p6, %p1343_p3 }
  0x11   :  { %1353 = shalt.err (!%p1350_p7)
}
  0x12   :  { %s1451_s11 = smov 64   ;;  %s1452_s12 = smov 4  }
  0x13   :  { %37 = dma.hbm_to_vmem [thread:$0]  %s1669_s1, 256, %s32_s25, [#allocation6], %s1451_s11, %s1451_s11, %s1452_s12  }
  0x14   :  { %s1453_s15 = smov [#allocation2]   ;;  %s1454_s17 = smov [#allocation7]  }
  0x15   :  { %s22_s16 = sshll.u32 %s1453_s15, 4  ;;  %s45_s18 = sshll.u32 %s1454_s17, 4  ;;  %s23_s16 = int_to_ptr.vmem [resolvable:$true] %s22_s16  ;;  %s46_s18 = int_to_ptr.vmem [resolvable:$true] %s45_s18 }
  0x16   :  { %s1354_s21 = scalar_lea.hbm %s1668_s0, 128 }
  0x17   :  { %p1355_p8 = scmp.ne.s32.totalorder %s1668_s0, %s1354_s21  ;;  %p1358_p9 = scmp.lt.u32.totalorder %s1354_s21, %s1668_s0 }
  0x19   :  { %p1360_p10 = pnand %p1358_p9, %p1355_p8 }
  0x1b   :  { %1363 = shalt.err (!%p1360_p10)
}
  0x1c   :  { %s1364_s1 = scalar_lea.vmem %s23_s16, 128  ;;  %p1369_p12 = scmp.lt.s32.totalorder %s23_s16, %s23_s16 }
  0x1d   :  { %p1365_p11 = scmp.ne.s32.totalorder %s23_s16, %s1364_s1  ;;  %p1370_p13 = scmp.lt.s32.totalorder %s1364_s1, %s1364_s1 }
  0x1f   :  { %p1371_p0 = por %p1370_p13, %p1369_p12 }
  0x21   :  { %p1372_p1 = pnand %p1371_p0, %p1365_p11 }
  0x23   :  { %1375 = shalt.err (!%p1372_p1)
}
  0x24   :  { %25 = dma.hbm_to_vmem [thread:$0]  %s1668_s0, 128, %s23_s16, [#allocation3]  }
  0x25   :  { %s1376_s30 = scalar_lea.hbm %s1671_s3, 6144 }
  0x26   :  { %p1377_p2 = scmp.ne.s32.totalorder %s1671_s3, %s1376_s30  ;;  %p1380_p3 = scmp.lt.u32.totalorder %s1376_s30, %s1671_s3 }
  0x28   :  { %p1382_p4 = pnand %p1380_p3, %p1377_p2 }
  0x2a   :  { %1385 = shalt.err (!%p1382_p4)
}
  0x2b   :  { %s1386_s14 = scalar_lea.vmem %s46_s18, 6144  ;;  %p1391_p6 = scmp.lt.s32.totalorder %s46_s18, %s46_s18 }
  0x2c   :  { %p1387_p5 = scmp.ne.s32.totalorder %s46_s18, %s1386_s14  ;;  %p1392_p7 = scmp.lt.s32.totalorder %s1386_s14, %s1386_s14 }
  0x2e   :  { %p1393_p8 = por %p1392_p7, %p1391_p6 }
  0x30   :  { %p1394_p9 = pnand %p1393_p8, %p1387_p5 }
  0x32   :  { %1397 = shalt.err (!%p1394_p9)
}
  0x33   :  { %51 = dma.hbm_to_vmem [thread:$0]  %s1671_s3, 6144, %s46_s18, [#allocation6], %s1451_s11, %s1451_s11, %s1452_s12  }
  0x34   :  { %s1455_s16 = smov [#allocation8]   ;;  %s1398_s21 = scalar_lea.hbm %s1673_s5, 1024 }
  0x35   :  { %s59_s17 = sshll.u32 %s1455_s16, 4  ;;  %p1399_p10 = scmp.ne.s32.totalorder %s1673_s5, %s1398_s21  ;;  %s60_s17 = int_to_ptr.vmem [resolvable:$true] %s59_s17 }
  0x36   :  { %p1402_p11 = scmp.lt.u32.totalorder %s1398_s21, %s1673_s5 }
  0x38   :  { %p1404_p12 = pnand %p1402_p11, %p1399_p10 }
  0x3a   :  { %1407 = shalt.err (!%p1404_p12)
}
  0x3b   :  { %s1408_s1 = scalar_lea.vmem %s60_s17, 1024  ;;  %p1413_p0 = scmp.lt.s32.totalorder %s60_s17, %s60_s17 }
  0x3c   :  { %p1409_p13 = scmp.ne.s32.totalorder %s60_s17, %s1408_s1  ;;  %p1414_p1 = scmp.lt.s32.totalorder %s1408_s1, %s1408_s1 }
  0x3e   :  { %p1415_p2 = por %p1414_p1, %p1413_p0 }
  0x40   :  { %p1416_p3 = pnand %p1415_p2, %p1409_p13 }
  0x42   :  { %1419 = shalt.err (!%p1416_p3)
}
  0x43   :  { %65 = dma.hbm_to_vmem [thread:$0]  %s1673_s5, 1024, %s60_s17, [#allocation9], %s1451_s11, %s1451_s11, %s1452_s12  }
  0x44   :  { %1442 = dma.done.wait [#allocation3], 128  }
  0x45   :  { %1443 = vsyncadd [#allocation3], 4294967168 }
  0x46   :  { %1444 = dma.done.wait [#allocation6], 6400  }
  0x47   :  { %1445 = vsyncadd [#allocation6], 4294960896 }
  0x48   :  { %1446 = dma.done.wait [#allocation9], 1024  }
  0x49   :  { %1447 = vsyncadd [#allocation9], 4294966272  ;;  %v81_v0 = vld [vmem:[#allocation2] sm:$0xff]  ;;  %vm83_vm0 = vcmask 261120   ;;  %v1272_v3 = vld [vmem:[#allocation5] sm:$0xff]   ;;  %v1456_v5 = vmov 0.0  }
  0x4a   :  { %v82_v1 = vmul.f32 %v81_v0, %v81_v0  ;;  %v1273_v4 = vld [vmem:[#allocation5 + $0x8] sm:$0xff]   ;;  %1115 = vmatprep.subr.bf16.mxu0 %v1456_v5  ;;  %vm1457_vm1 = vmmov 0   ;;  %1123 = vmatprep.subr.bf16.mxu1 %v1456_v5  ;;  %v1274_v6 = vld [vmem:[#allocation7] sm:$0xff]   ;;  %v1275_v7 = vld [vmem:[#allocation7 + $0x8] sm:$0xff]   ;;  %s1458_s16 = smov [#allocation10]  }
  0x4b   :  { %1119 = vmatprep.mubr.msk.bf16.mxu0 %vm1457_vm1, %v1456_v5  ;;  %1116 = vmatpush3.bf16.msra.mxu0 %v1272_v3  ;;  %v1276_v8 = vld [vmem:[#allocation7 + $0x10] sm:$0xff]   ;;  %v1277_v9 = vld [vmem:[#allocation7 + $0x18] sm:$0xff]   ;;  %v1278_v10 = vld [vmem:[#allocation7 + $0x20] sm:$0xff]   ;;  %s966_s17 = sshll.u32 %s1458_s16, 4  ;;  %s967_s17 = int_to_ptr.vmem [resolvable:$true] %s966_s17 }
  0x4c   :  { %v84_v2 = vsel %vm83_vm0, %v82_v1, 0.0  ;;  %1117 = vmatprep.subr.bf16.mxu0 %v1456_v5  ;;  %1139 = vmatprep.mubr.msk.bf16.mxu1 %vm1457_vm1, %v1456_v5  ;;  %v1279_v11 = vld [vmem:[#allocation7 + $0x28] sm:$0xff]   ;;  %v1280_v18 = vld [vmem:[#allocation7 + $0x30] sm:$0xff]   ;;  %v1281_v19 = vld [vmem:[#allocation7 + $0x38] sm:$0xff]   ;;  %p1425_p5 = scmp.lt.s32.totalorder %s967_s17, %s967_s17 }
  0x4d   :  { %85 = vadd.xlane.f32.xlu0 %v84_v2  ;;  %1124 = vmatpush3.bf16.msra.mxu1 %v1274_v6  ;;  %v1282_v20 = vld [vmem:[#allocation7 + $0x40] sm:$0xff]   ;;  %v1283_v21 = vld [vmem:[#allocation7 + $0x48] sm:$0xff]   ;;  %v1284_v22 = vld [vmem:[#allocation7 + $0x50] sm:$0xff]  }
  0x4e   :  { %1125 = vmatprep.subr.bf16.mxu1 %v1456_v5  ;;  %v1285_v23 = vld [vmem:[#allocation7 + $0x58] sm:$0xff]   ;;  %v1286_v24 = vld [vmem:[#allocation7 + $0x60] sm:$0xff]   ;;  %v1287_v25 = vld [vmem:[#allocation7 + $0x68] sm:$0xff]  }
  0x4f   :  { %1118 = vmatpush3.bf16.msra.mxu0 %v1273_v4  ;;  %v977_v26 = vld [vmem:[%s1670_s2] ss:$0 sm:$0xff]  ;;  %v1288_v34 = vld [vmem:[#allocation7 + $0x70] sm:$0xff]   ;;  %v1289_v35 = vld [vmem:[#allocation7 + $0x78] sm:$0xff]  }
  0x50   :  { %1143 = vmatprep.subr.bf16.mxu0 %v1456_v5  ;;  %v1290_v36 = vld [vmem:[#allocation7 + $0x80] sm:$0xff]   ;;  %v1291_v37 = vld [vmem:[#allocation7 + $0x88] sm:$0xff]   ;;  %v1292_v38 = vld [vmem:[#allocation7 + $0x90] sm:$0xff]  }
  0x51   :  { %1126 = vmatpush3.bf16.msra.mxu1 %v1275_v7  ;;  %v1293_v39 = vld [vmem:[#allocation7 + $0x98] sm:$0xff]   ;;  %v1294_v40 = vld [vmem:[#allocation7 + $0xa0] sm:$0xff]   ;;  %v1295_v41 = vld [vmem:[#allocation7 + $0xa8] sm:$0xff]  }
  0x52   :  { %1127 = vmatprep.subr.bf16.mxu1 %v1456_v5  ;;  %v981_v42 = vld [vmem:[%s1672_s4] ss:$0 sm:$0xff]  ;;  %v1296_v50 = vld [vmem:[#allocation7 + $0xb0] sm:$0xff]   ;;  %v1297_v51 = vld [vmem:[#allocation7 + $0xb8] sm:$0xff]  }
  0x53   :  { %v1298_v52 = vld [vmem:[#allocation7 + $0xc0] sm:$0xff]   ;;  %v1299_v53 = vld [vmem:[#allocation7 + $0xc8] sm:$0xff]   ;;  %v1300_v54 = vld [vmem:[#allocation7 + $0xd0] sm:$0xff]  }
  0x54   :  { %v1301_v55 = vld [vmem:[#allocation7 + $0xd8] sm:$0xff]   ;;  %v1302_v56 = vld [vmem:[#allocation7 + $0xe0] sm:$0xff]   ;;  %v1303_v57 = vld [vmem:[#allocation7 + $0xe8] sm:$0xff]  }
  0x55   :  { %1128 = vmatpush3.bf16.msra.mxu1 %v1276_v8  ;;  %v991_v58 = vld [vmem:[%s1672_s4 + $0x1] ss:$0 sm:$0xff]  ;;  %v1304_v2 = vld [vmem:[#allocation7 + $0xf0] sm:$0xff]   ;;  %v1305_v3 = vld [vmem:[#allocation7 + $0xf8] sm:$0xff]  }
  0x56   :  { %1129 = vmatprep.subr.bf16.mxu1 %v1456_v5  ;;  %v1306_v4 = vld [vmem:[#allocation7 + $0x100] sm:$0xff]   ;;  %v1307_v6 = vld [vmem:[#allocation7 + $0x108] sm:$0xff]   ;;  %v1308_v7 = vld [vmem:[#allocation7 + $0x110] sm:$0xff]  }
  0x57   :  { %v1309_v8 = vld [vmem:[#allocation7 + $0x118] sm:$0xff]  }
  0x59   :  { %1130 = vmatpush3.bf16.msra.mxu1 %v1277_v9  ;;  %v1310_v9 = vld [vmem:[#allocation7 + $0x120] sm:$0xff]  }
  0x5a   :  { %1131 = vmatprep.subr.bf16.mxu1 %v1456_v5 }
  0x5d   :  { %1132 = vmatpush3.bf16.msra.mxu1 %v1278_v10  ;;  %v1311_v10 = vld [vmem:[#allocation7 + $0x128] sm:$0xff]  }
  0x5e   :  { %1133 = vmatprep.subr.bf16.mxu1 %v1456_v5 }
  0x61   :  { %1134 = vmatpush3.bf16.msra.mxu1 %v1279_v11  ;;  %v1001_v11 = vld [vmem:[%s1672_s4 + $0x2] ss:$0 sm:$0xff] }
  0x62   :  { %1135 = vmatprep.subr.bf16.mxu1 %v1456_v5 }
  0x65   :  { %1136 = vmatpush3.bf16.msra.mxu1 %v1280_v18 }
  0x66   :  { %1137 = vmatprep.subr.bf16.mxu1 %v1456_v5 }
  0x69   :  { %1138 = vmatpush3.bf16.msra.mxu1 %v1281_v19  ;;  %v1312_v19 = vld [vmem:[#allocation7 + $0x130] sm:$0xff]  }
  0x6a   :  { %1163 = vmatprep.subr.bf16.mxu1 %v1456_v5 }
  0xda   :  { %v86_v12 = vpop.xlane.xlu0 %85 }
  0xdb   :  { %v87_v13 = vmul.f32 0.03125, %v86_v12 }
  0xdd   :  { %v88_v14 = vadd.f32 1e-08, %v87_v13 }
  0xdf   :  { %1330 = vrsqrt.f32 %v88_v14 }
  0xe9   :  { %v1331_v15 = vpop.eup %1330 }
  0xea   :  { %v90_v16 = vmul.f32 %v1331_v15, %v81_v0 }
  0xec   :  { %v91_v17 = vpack.c.bf16 %v90_v16, %v90_v16 }
  0xee   :  { %1120 = vmatmul.mubr.msk.bf16.vlgmr.msra.gmra.mrb[0].mxu0 %vm83_vm0, %v91_v17 }
  0xef   :  { %1159 = vmatprep.mubr.msk.bf16.mxu0 %vm1457_vm1, %v1456_v5  ;;  %1144 = vmatpush3.bf16.msra.mxu0 %v1282_v20  ;;  %v1313_v20 = vld [vmem:[#allocation7 + $0x138] sm:$0xff]  }
  0xf0   :  { %1145 = vmatprep.subr.bf16.mxu0 %v1456_v5 }
  0xf3   :  { %1146 = vmatpush3.bf16.msra.mxu0 %v1283_v21  ;;  %v1314_v21 = vld [vmem:[#allocation7 + $0x140] sm:$0xff]  }
  0xf4   :  { %1147 = vmatprep.subr.bf16.mxu0 %v1456_v5 }
  0xf7   :  { %1148 = vmatpush3.bf16.msra.mxu0 %v1284_v22  ;;  %v1315_v22 = vld [vmem:[#allocation7 + $0x148] sm:$0xff]  }
  0xf8   :  { %1149 = vmatprep.subr.bf16.mxu0 %v1456_v5 }
  0xfb   :  { %1150 = vmatpush3.bf16.msra.mxu0 %v1285_v23  ;;  %v1316_v23 = vld [vmem:[#allocation7 + $0x150] sm:$0xff]  }
  0xfc   :  { %1151 = vmatprep.subr.bf16.mxu0 %v1456_v5 }
  0xff   :  { %1152 = vmatpush3.bf16.msra.mxu0 %v1286_v24  ;;  %v1317_v24 = vld [vmem:[#allocation7 + $0x158] sm:$0xff]  }
 0x100   :  { %1153 = vmatprep.subr.bf16.mxu0 %v1456_v5 }
 0x103   :  { %1154 = vmatpush3.bf16.msra.mxu0 %v1287_v25  ;;  %v1318_v25 = vld [vmem:[#allocation7 + $0x160] sm:$0xff]  }
 0x104   :  { %1155 = vmatprep.subr.bf16.mxu0 %v1456_v5 }
 0x107   :  { %1156 = vmatpush3.bf16.msra.mxu0 %v1288_v34 }
 0x108   :  { %1157 = vmatprep.subr.bf16.mxu0 %v1456_v5 }
 0x10b   :  { %1158 = vmatpush3.bf16.msra.mxu0 %v1289_v35  ;;  %v1320_v35 = vld [vmem:[#allocation7 + $0x170] sm:$0xff]  }
 0x10c   :  { %1183 = vmatprep.subr.bf16.mxu0 %v1456_v5 }
 0x1c1   :  { %v152_v27 = vpop.f32.mrb[0].mxu0 }
 0x1c2   :  { %v153_v28 = vadd.f32 %v977_v26, %v152_v27  ;;  %v1121_v29 = vpop.f32.mrb[1].mxu0  ;;  %v1319_v26 = vld [vmem:[#allocation7 + $0x168] sm:$0xff]  }
 0x1c3   :  { %v155_v30 = vpop.f32.mrb[2].mxu0  ;;  %v1011_v27 = vld [vmem:[%s1672_s4 + $0x3] ss:$0 sm:$0xff] }
 0x1c4   :  { %v158_v31 = vmax.f32 %v153_v28, 0.0  ;;  %v1122_v32 = vpop.f32.mrb[3].mxu0 }
 0x1c6   :  { %v159_v33 = vpack.c.bf16 %v158_v31, %v158_v31 }
 0x1c8   :  { %1140 = vmatmul.mubr.bf16.vlgmr.msra.gmra.mrb[0].mxu1 %v159_v33 }
 0x1c9   :  { %1179 = vmatprep.mubr.msk.bf16.mxu1 %vm1457_vm1, %v1456_v5  ;;  %1164 = vmatpush3.bf16.msra.mxu1 %v1290_v36  ;;  %v1321_v36 = vld [vmem:[#allocation7 + $0x178] sm:$0xff]  }
 0x1ca   :  { %1165 = vmatprep.subr.bf16.mxu1 %v1456_v5 }
 0x1cd   :  { %1166 = vmatpush3.bf16.msra.mxu1 %v1291_v37  ;;  %v1322_v37 = vld [vmem:[#allocation8] sm:$0xff]  }
 0x1ce   :  { %1167 = vmatprep.subr.bf16.mxu1 %v1456_v5 }
 0x1d1   :  { %1168 = vmatpush3.bf16.msra.mxu1 %v1292_v38  ;;  %v1323_v38 = vld [vmem:[#allocation8 + $0x8] sm:$0xff]  }
 0x1d2   :  { %1169 = vmatprep.subr.bf16.mxu1 %v1456_v5 }
 0x1d5   :  { %1170 = vmatpush3.bf16.msra.mxu1 %v1293_v39  ;;  %v1324_v39 = vld [vmem:[#allocation8 + $0x10] sm:$0xff]  }
 0x1d6   :  { %1171 = vmatprep.subr.bf16.mxu1 %v1456_v5 }
 0x1d9   :  { %1172 = vmatpush3.bf16.msra.mxu1 %v1294_v40  ;;  %v1325_v40 = vld [vmem:[#allocation8 + $0x18] sm:$0xff]  }
 0x1da   :  { %1173 = vmatprep.subr.bf16.mxu1 %v1456_v5 }
 0x1dd   :  { %1174 = vmatpush3.bf16.msra.mxu1 %v1295_v41  ;;  %v1326_v41 = vld [vmem:[#allocation8 + $0x20] sm:$0xff]  }
 0x1de   :  { %1175 = vmatprep.subr.bf16.mxu1 %v1456_v5 }
 0x1e1   :  { %1176 = vmatpush3.bf16.msra.mxu1 %v1296_v50 }
 0x1e2   :  { %1177 = vmatprep.subr.bf16.mxu1 %v1456_v5 }
 0x1e5   :  { %1178 = vmatpush3.bf16.msra.mxu1 %v1297_v51  ;;  %v1328_v51 = vld [vmem:[#allocation8 + $0x30] sm:$0xff]  }
 0x1e6   :  { %1203 = vmatprep.subr.bf16.mxu1 %v1456_v5 }
 0x29b   :  { %v265_v43 = vpop.f32.mrb[0].mxu1 }
 0x29c   :  { %v266_v44 = vadd.f32 %v981_v42, %v265_v43  ;;  %v1141_v45 = vpop.f32.mrb[1].mxu1  ;;  %v1327_v42 = vld [vmem:[#allocation8 + $0x28] sm:$0xff]  }
 0x29d   :  { %v268_v46 = vpop.f32.mrb[2].mxu1  ;;  %v1021_v43 = vld [vmem:[%s1672_s4 + $0x4] ss:$0 sm:$0xff] }
 0x29e   :  { %v271_v47 = vmax.f32 %v266_v44, 0.0  ;;  %v1142_v48 = vpop.f32.mrb[3].mxu1 }
 0x2a0   :  { %v272_v49 = vpack.c.bf16 %v271_v47, %v271_v47 }
 0x2a2   :  { %1160 = vmatmul.mubr.bf16.vlgmr.msra.gmra.mrb[4].mxu0 %v272_v49 }
 0x2a3   :  { %1199 = vmatprep.mubr.msk.bf16.mxu0 %vm1457_vm1, %v1456_v5  ;;  %1184 = vmatpush3.bf16.msra.mxu0 %v1298_v52  ;;  %v1329_v52 = vld [vmem:[#allocation8 + $0x38] sm:$0xff]  }
 0x2a4   :  { %1185 = vmatprep.subr.bf16.mxu0 %v1456_v5 }
 0x2a7   :  { %1186 = vmatpush3.bf16.msra.mxu0 %v1299_v53  ;;  %v1031_v53 = vld [vmem:[%s1672_s4 + $0x5] ss:$0 sm:$0xff]  ;;  %s1420_s4 = scalar_lea.vmem %s967_s17, 128 }
 0x2a8   :  { %1187 = vmatprep.subr.bf16.mxu0 %v1456_v5  ;;  %p1421_p4 = scmp.ne.s32.totalorder %s967_s17, %s1420_s4  ;;  %p1426_p6 = scmp.lt.s32.totalorder %s1420_s4, %s1420_s4 }
 0x2aa   :  { %p1427_p7 = por %p1426_p6, %p1425_p5 }
 0x2ab   :  { %1188 = vmatpush3.bf16.msra.mxu0 %v1300_v54 }
 0x2ac   :  { %1189 = vmatprep.subr.bf16.mxu0 %v1456_v5  ;;  %p1428_p8 = pnand %p1427_p7, %p1421_p4 }
 0x2af   :  { %1190 = vmatpush3.bf16.msra.mxu0 %v1301_v55 }
 0x2b0   :  { %1191 = vmatprep.subr.bf16.mxu0 %v1456_v5 }
 0x2b3   :  { %1192 = vmatpush3.bf16.msra.mxu0 %v1302_v56 }
 0x2b4   :  { %1193 = vmatprep.subr.bf16.mxu0 %v1456_v5 }
 0x2b7   :  { %1194 = vmatpush3.bf16.msra.mxu0 %v1303_v57 }
 0x2b8   :  { %1195 = vmatprep.subr.bf16.mxu0 %v1456_v5 }
 0x2bb   :  { %1196 = vmatpush3.bf16.msra.mxu0 %v1304_v2 }
 0x2bc   :  { %1197 = vmatprep.subr.bf16.mxu0 %v1456_v5 }
 0x2bf   :  { %1198 = vmatpush3.bf16.msra.mxu0 %v1305_v3 }
 0x2c0   :  { %1223 = vmatprep.subr.bf16.mxu0 %v1456_v5 }
 0x375   :  { %v380_v59 = vpop.f32.mrb[4].mxu0 }
 0x376   :  { %v381_v60 = vadd.f32 %v991_v58, %v380_v59  ;;  %v1161_v61 = vpop.f32.mrb[5].mxu0 }
 0x377   :  { %v383_v62 = vpop.f32.mrb[6].mxu0  ;;  %v1040_v61 = vld [vmem:[%s1674_s6] ss:$0 sm:$0xff] }
 0x378   :  { %v386_v63 = vmax.f32 %v381_v60, 0.0  ;;  %v1162_v0 = vpop.f32.mrb[7].mxu0 }
 0x37a   :  { %v387_v1 = vpack.c.bf16 %v386_v63, %v386_v63 }
 0x37c   :  { %1180 = vmatmul.mubr.bf16.vlgmr.msra.gmra.mrb[4].mxu1 %v387_v1 }
 0x37d   :  { %1219 = vmatprep.mubr.msk.bf16.mxu1 %vm1457_vm1, %v1456_v5  ;;  %1204 = vmatpush3.bf16.msra.mxu1 %v1306_v4 }
 0x37e   :  { %1205 = vmatprep.subr.bf16.mxu1 %v1456_v5 }
 0x381   :  { %1206 = vmatpush3.bf16.msra.mxu1 %v1307_v6 }
 0x382   :  { %1207 = vmatprep.subr.bf16.mxu1 %v1456_v5 }
 0x385   :  { %1208 = vmatpush3.bf16.msra.mxu1 %v1308_v7 }
 0x386   :  { %1209 = vmatprep.subr.bf16.mxu1 %v1456_v5 }
 0x389   :  { %1210 = vmatpush3.bf16.msra.mxu1 %v1309_v8 }
 0x38a   :  { %1211 = vmatprep.subr.bf16.mxu1 %v1456_v5 }
 0x38d   :  { %1212 = vmatpush3.bf16.msra.mxu1 %v1310_v9 }
 0x38e   :  { %1213 = vmatprep.subr.bf16.mxu1 %v1456_v5 }
 0x391   :  { %1214 = vmatpush3.bf16.msra.mxu1 %v1311_v10 }
 0x392   :  { %1215 = vmatprep.subr.bf16.mxu1 %v1456_v5 }
 0x395   :  { %1216 = vmatpush3.bf16.msra.mxu1 %v1312_v19 }
 0x396   :  { %1217 = vmatprep.subr.bf16.mxu1 %v1456_v5 }
 0x399   :  { %1218 = vmatpush3.bf16.msra.mxu1 %v1313_v20 }
 0x39a   :  { %1243 = vmatprep.subr.bf16.mxu1 %v1456_v5 }
 0x44f   :  { %v495_v12 = vpop.f32.mrb[4].mxu1 }
 0x450   :  { %v496_v13 = vadd.f32 %v1001_v11, %v495_v12  ;;  %v1181_v14 = vpop.f32.mrb[5].mxu1 }
 0x451   :  { %v498_v15 = vpop.f32.mrb[6].mxu1 }
 0x452   :  { %v501_v16 = vmax.f32 %v496_v13, 0.0  ;;  %v1182_v17 = vpop.f32.mrb[7].mxu1 }
 0x454   :  { %v502_v18 = vpack.c.bf16 %v501_v16, %v501_v16 }
 0x456   :  { %1200 = vmatmul.mubr.bf16.vlgmr.msra.gmra.mrb[8].mxu0 %v502_v18 }
 0x457   :  { %1239 = vmatprep.mubr.msk.bf16.mxu0 %vm1457_vm1, %v1456_v5  ;;  %1224 = vmatpush3.bf16.msra.mxu0 %v1314_v21 }
 0x458   :  { %1225 = vmatprep.subr.bf16.mxu0 %v1456_v5 }
 0x45b   :  { %1226 = vmatpush3.bf16.msra.mxu0 %v1315_v22 }
 0x45c   :  { %1227 = vmatprep.subr.bf16.mxu0 %v1456_v5 }
 0x45f   :  { %1228 = vmatpush3.bf16.msra.mxu0 %v1316_v23 }
 0x460   :  { %1229 = vmatprep.subr.bf16.mxu0 %v1456_v5 }
 0x463   :  { %1230 = vmatpush3.bf16.msra.mxu0 %v1317_v24 }
 0x464   :  { %1231 = vmatprep.subr.bf16.mxu0 %v1456_v5 }
 0x467   :  { %1232 = vmatpush3.bf16.msra.mxu0 %v1318_v25 }
 0x468   :  { %1233 = vmatprep.subr.bf16.mxu0 %v1456_v5 }
 0x46b   :  { %1234 = vmatpush3.bf16.msra.mxu0 %v1319_v26 }
 0x46c   :  { %1235 = vmatprep.subr.bf16.mxu0 %v1456_v5 }
 0x46f   :  { %1236 = vmatpush3.bf16.msra.mxu0 %v1320_v35 }
 0x470   :  { %1237 = vmatprep.subr.bf16.mxu0 %v1456_v5 }
 0x473   :  { %1238 = vmatpush3.bf16.msra.mxu0 %v1321_v36 }
 0x529   :  { %v610_v28 = vpop.f32.mrb[8].mxu0 }
 0x52a   :  { %v611_v29 = vadd.f32 %v1011_v27, %v610_v28  ;;  %v1201_v30 = vpop.f32.mrb[9].mxu0 }
 0x52b   :  { %v613_v31 = vpop.f32.mrb[10].mxu0 }
 0x52c   :  { %v616_v32 = vmax.f32 %v611_v29, 0.0  ;;  %v1202_v33 = vpop.f32.mrb[11].mxu0 }
 0x52e   :  { %v617_v34 = vpack.c.bf16 %v616_v32, %v616_v32 }
 0x530   :  { %1220 = vmatmul.mubr.bf16.vlgmr.msra.gmra.mrb[8].mxu1 %v617_v34 }
 0x531   :  { %1259 = vmatprep.mubr.msk.bf16.mxu1 %vm1457_vm1, %v1456_v5  ;;  %1244 = vmatpush3.bf16.msra.mxu1 %v1322_v37 }
 0x532   :  { %1245 = vmatprep.subr.bf16.mxu1 %v1456_v5 }
 0x535   :  { %1246 = vmatpush3.bf16.msra.mxu1 %v1323_v38 }
 0x536   :  { %1247 = vmatprep.subr.bf16.mxu1 %v1456_v5 }
 0x539   :  { %1248 = vmatpush3.bf16.msra.mxu1 %v1324_v39 }
 0x53a   :  { %1249 = vmatprep.subr.bf16.mxu1 %v1456_v5 }
 0x53d   :  { %1250 = vmatpush3.bf16.msra.mxu1 %v1325_v40 }
 0x53e   :  { %1251 = vmatprep.subr.bf16.mxu1 %v1456_v5 }
 0x541   :  { %1252 = vmatpush3.bf16.msra.mxu1 %v1326_v41 }
 0x542   :  { %1253 = vmatprep.subr.bf16.mxu1 %v1456_v5 }
 0x545   :  { %1254 = vmatpush3.bf16.msra.mxu1 %v1327_v42 }
 0x546   :  { %1255 = vmatprep.subr.bf16.mxu1 %v1456_v5 }
 0x549   :  { %1256 = vmatpush3.bf16.msra.mxu1 %v1328_v51 }
 0x54a   :  { %1257 = vmatprep.subr.bf16.mxu1 %v1456_v5 }
 0x54d   :  { %1258 = vmatpush3.bf16.msra.mxu1 %v1329_v52 }
 0x603   :  { %v725_v44 = vpop.f32.mrb[8].mxu1 }
 0x604   :  { %v726_v45 = vadd.f32 %v1021_v43, %v725_v44  ;;  %v1221_v46 = vpop.f32.mrb[9].mxu1 }
 0x605   :  { %v728_v47 = vpop.f32.mrb[10].mxu1 }
 0x606   :  { %v731_v48 = vmax.f32 %v726_v45, 0.0  ;;  %v1222_v49 = vpop.f32.mrb[11].mxu1 }
 0x608   :  { %v732_v50 = vpack.c.bf16 %v731_v48, %v731_v48 }
 0x60a   :  { %1240 = vmatmul.mubr.bf16.vlgmr.msra.gmra.mrb[12].mxu0 %v732_v50 }
 0x6dd   :  { %v840_v54 = vpop.f32.mrb[12].mxu0 }
 0x6de   :  { %v841_v55 = vadd.f32 %v1031_v53, %v840_v54  ;;  %v1241_v56 = vpop.f32.mrb[13].mxu0 }
 0x6df   :  { %v843_v57 = vpop.f32.mrb[14].mxu0 }
 0x6e0   :  { %v846_v58 = vmax.f32 %v841_v55, 0.0  ;;  %v1242_v59 = vpop.f32.mrb[15].mxu0 }
 0x6e2   :  { %v847_v60 = vpack.c.bf16 %v846_v58, %v846_v58 }
 0x6e4   :  { %1260 = vmatmul.mubr.bf16.vlgmr.msra.gmra.mrb[12].mxu1 %v847_v60 }
 0x7b7   :  { %v953_v5 = vpop.f32.mrb[12].mxu1 }
 0x7b8   :  { %v954_v62 = vadd.f32 %v1040_v61, %v953_v5  ;;  %v1261_v63 = vpop.f32.mrb[13].mxu1 }
 0x7b9   :  { %v956_v0 = vpop.f32.mrb[14].mxu1 }
 0x7ba   :  { %959 = vst [vmem:[#allocation10] sm:$0xff] %v954_v62  ;;  %v1262_v1 = vpop.f32.mrb[15].mxu1 }
 0x7bb   :  { %1431 = shalt.err (!%p1428_p8)
}
 0x7bc   :  { %s1432_s6 = scalar_lea.hbm %s1675_s7, 128 }
 0x7bd   :  { %p1433_p9 = scmp.ne.s32.totalorder %s1675_s7, %s1432_s6  ;;  %p1436_p10 = scmp.lt.u32.totalorder %s1432_s6, %s1675_s7 }
 0x7bf   :  { %p1438_p11 = pnand %p1436_p10, %p1433_p9 }
 0x7c1   :  { %1441 = shalt.err (!%p1438_p11)
}
 0x7c2   :  { %969 = dma.vmem_to_hbm [thread:$0]  %s967_s17, 128, %s1675_s7, [#allocation4]  }
 0x7c3   :  { %1448 = dma.done.wait [#allocation4], 128  }
 0x7c4   :  { %1449 = vsyncadd [#allocation4], 4294967168 }
 0x7c5   :  { %973 = vsyncpa [#allocation3], 1 }
 0x7c6   :  { %974 = vsyncpa [#allocation6], 1 }
 0x7c7   :  { %975 = vsyncpa [#allocation9], 1 }
 0x7c8   :  { %976 = vsyncpa [#allocation4], 1 }

</bundles_post_ra>
